<compile_context>
chip_gen: v7x
topology: tpu7x:2x2x1
jax: 0.10.0
libtpu: 0.0.40
codegen_flags: <defaults>
</compile_context>

<pallas_src>
import functools

import jax
import jax.numpy as jnp
from jax.experimental import pallas as pl
from jax.experimental.pallas import tpu as pltpu


# ----------------------------------------------------------------------------
# Fused kernel: mega branch + sage branch + fc fusion head.
# Whole arrays live in VMEM (single invocation, no grid) — shapes are small.
# ----------------------------------------------------------------------------
def _fused_kernel(scal_ref,                      # SMEM (5,): [b4, bm3, fc_w0, fc_w1, fc_b]
                  emb_ref, mask_ref,             # (B,S,D_in), (B,S)
                  x_ref, adj_ref,                # (N,C), (N,N) row-normalized
                  w_emb_ref, w1_ref, w2_ref, w3_ref,      # mega weights
                  wsage1_ref, wsage2_ref, wm1_ref, wm2_ref,  # sage weights (convs stacked)
                  vec_ref,                       # (11, pad_w) packed bias/vector params
                  out_ref):                      # (B, 1)
    B, S, D = emb_ref.shape
    N, C = x_ref.shape
    E = w_emb_ref.shape[1]
    MH1 = w1_ref.shape[1]
    MH2 = w2_ref.shape[1]
    MH3 = w3_ref.shape[1]
    HC = wsage1_ref.shape[1]
    SH1 = wm1_ref.shape[1]
    SH2 = wm2_ref.shape[1]

    # ---- unpack the padded parameter-vector slab (static, lane-aligned slices) ----
    b_emb = vec_ref[0:1, :E]        # (1, E)
    w_att = vec_ref[1:2, :E]        # (1, E)
    b1 = vec_ref[2:3, :MH1]
    b2 = vec_ref[3:4, :MH2]
    b3 = vec_ref[4:5, :MH3]
    w4 = vec_ref[5:6, :MH3]         # final mega projection as a vector
    sb1 = vec_ref[6:7, :HC]
    sb2 = vec_ref[7:8, :HC]
    bm1 = vec_ref[8:9, :SH1]
    bm2 = vec_ref[9:10, :SH2]
    wm3 = vec_ref[10:11, :SH2]      # final sage projection as a vector

    b4 = scal_ref[0]
    bm3 = scal_ref[1]
    fc_w0 = scal_ref[2]
    fc_w1 = scal_ref[3]
    fc_b = scal_ref[4]

    # ------------------------------------------------------------------
    # Mega branch: masked attention pooling + 3-layer MLP regressor.
    # ------------------------------------------------------------------
    xin = emb_ref[...]                                    # (B, S, D)
    mask = mask_ref[...]                                  # (B, S)

    # embedding projection as one 2-D MXU matmul
    x2d = xin.reshape(B * S, D)
    h2d = jnp.dot(x2d, w_emb_ref[...],
                  preferred_element_type=jnp.float32) + b_emb     # (B*S, E)
    h2d = jnp.maximum(h2d, 0.0)
    h = h2d.reshape(B, S, E)

    # attention scores: VPU multiply + lane reduce (no 1-lane matmul)
    scores = jnp.sum(h * w_att.reshape(1, 1, E), axis=-1)         # (B, S)
    scores = jnp.where(mask > 0.5, scores, jnp.full_like(scores, -1e9))
    scores = scores - jnp.max(scores, axis=-1, keepdims=True)
    p = jnp.exp(scores) * mask
    denom = jnp.sum(p, axis=-1, keepdims=True) + 1e-9
    p = p * pl.reciprocal(denom, approx=True)                     # EUP reciprocal

    pooled = jnp.sum(p[..., None] * h, axis=1)                    # (B, E)

    h1 = jnp.maximum(jnp.dot(pooled, w1_ref[...],
                             preferred_element_type=jnp.float32) + b1, 0.0)
    h2 = jnp.maximum(jnp.dot(h1, w2_ref[...],
                             preferred_element_type=jnp.float32) + b2, 0.0)
    h3 = jnp.maximum(jnp.dot(h2, w3_ref[...],
                             preferred_element_type=jnp.float32) + b3, 0.0)
    # scalar head: VPU mul + lane reduce instead of (MH3 x 1) matmul
    mega = jnp.sum(h3 * w4, axis=-1, keepdims=True) + b4          # (B, 1)

    # ------------------------------------------------------------------
    # Sage branch: 2 mean-agg GraphSAGE convs (1 matmul each) + MLP head.
    # ------------------------------------------------------------------
    xg = x_ref[...]                                               # (N, C)
    adj = adj_ref[...]                                            # (N, N)

    agg1 = jnp.dot(adj, xg, preferred_element_type=jnp.float32)   # (N, C)
    cat1 = jnp.concatenate([xg, agg1], axis=-1)                   # (N, 2C)
    g1 = jnp.maximum(jnp.dot(cat1, wsage1_ref[...],
                             preferred_element_type=jnp.float32) + sb1, 0.0)   # (N, HC)

    agg2 = jnp.dot(adj, g1, preferred_element_type=jnp.float32)   # (N, HC)
    cat2 = jnp.concatenate([g1, agg2], axis=-1)                   # (N, 2HC)
    g2 = jnp.maximum(jnp.dot(cat2, wsage2_ref[...],
                             preferred_element_type=jnp.float32) + sb2, 0.0)   # (N, HC)

    m1 = jnp.maximum(jnp.dot(g2, wm1_ref[...],
                             preferred_element_type=jnp.float32) + bm1, 0.0)
    m2 = jnp.maximum(jnp.dot(m1, wm2_ref[...],
                             preferred_element_type=jnp.float32) + bm2, 0.0)
    # scalar head: VPU mul + lane reduce instead of (SH2 x 1) matmul
    sage = jnp.sum(m2 * wm3, axis=-1, keepdims=True) + bm3        # (N, 1)

    # ------------------------------------------------------------------
    # Fusion head: fc(stack([mega, sage[:B]], dim=1)).squeeze()
    # ------------------------------------------------------------------
    logits = mega * fc_w0 + sage[:B, :] * fc_w1 + fc_b            # (B, 1)
    out_ref[...] = logits


# ----------------------------------------------------------------------------
# Host-side packing + pallas_call wrapper.
# ----------------------------------------------------------------------------
def _pack_rows(vectors, width):
    """Stack 1-D parameter vectors into a lane-aligned (n_rows, width) slab."""
    rows = []
    for v in vectors:
        v = v.reshape(-1).astype(jnp.float32)
        rows.append(jnp.pad(v, (0, width - v.shape[0])))
    return jnp.stack(rows, axis=0)


def fused_forward(inputs_embeds, attention_mask, x, adj_norm,
                  mega_params, sage_params, fc_w, fc_b):
    B = inputs_embeds.shape[0]

    # Pack per-layer bias/vector params into one VMEM slab (lane-aligned rows).
    dims = (mega_params['b_emb'].shape[0], mega_params['w1'].shape[1],
            mega_params['w2'].shape[1], mega_params['w3'].shape[1],
            sage_params['ws1'].shape[1], sage_params['wm1'].shape[1],
            sage_params['wm2'].shape[1])
    pad_w = ((max(dims) + 127) // 128) * 128
    vec = _pack_rows([mega_params['b_emb'], mega_params['w_att'],
                      mega_params['b1'], mega_params['b2'], mega_params['b3'],
                      mega_params['w4'],
                      sage_params['b1'], sage_params['b2'],
                      sage_params['bm1'], sage_params['bm2'],
                      sage_params['wm3']], pad_w)                 # (11, pad_w)

    # Pack the 5 true scalars into SMEM.
    scal = jnp.concatenate([mega_params['b4'], sage_params['bm3'],
                            fc_w, fc_b]).astype(jnp.float32)      # (5,)

    # Stack each SAGEConv's self/neighbor weights -> single matmul per conv.
    wsage1 = jnp.concatenate([sage_params['ws1'], sage_params['wn1']], axis=0)
    wsage2 = jnp.concatenate([sage_params['ws2'], sage_params['wn2']], axis=0)

    vmem = pl.BlockSpec(memory_space=pltpu.MemorySpace.VMEM)
    smem = pl.BlockSpec(memory_space=pltpu.MemorySpace.SMEM)

    args = (scal,
            inputs_embeds.astype(jnp.float32), attention_mask.astype(jnp.float32),
            x.astype(jnp.float32), adj_norm,
            mega_params['w_emb'], mega_params['w1'], mega_params['w2'], mega_params['w3'],
            wsage1, wsage2, sage_params['wm1'], sage_params['wm2'],
            vec)
    in_specs = [smem] + [vmem] * (len(args) - 1)

    return pl.pallas_call(
        _fused_kernel,
        out_shape=jax.ShapeDtypeStruct((B, 1), jnp.float32),
        in_specs=in_specs,
        out_specs=vmem,
    )(*args)


# ----------------------------------------------------------------------------
# Glue: adjacency construction, parameter init, full forward.
# ----------------------------------------------------------------------------
def build_adjacency(edge_index, num_nodes):
    """Row-normalized dense adjacency (mean aggregation over incoming edges)."""
    src, dst = edge_index[0], edge_index[1]
    adj = jnp.zeros((num_nodes, num_nodes), jnp.float32)
    adj = adj.at[dst, src].add(1.0)
    deg = jnp.sum(adj, axis=1, keepdims=True)
    return adj / jnp.maximum(deg, 1.0)


def init_params(key, *, input_dim, embed, mh1, mh2, mh3,
                in_channels, hidden_channels, sh1, sh2):
    def dense(k, fan_in, shape):
        return (jax.random.normal(k, shape, jnp.float32) / jnp.sqrt(fan_in)).astype(jnp.float32)

    keys = jax.random.split(key, 16)
    mega = {
        'w_emb': dense(keys[0], input_dim, (input_dim, embed)),
        'b_emb': jnp.zeros((embed,), jnp.float32),
        'w_att': dense(keys[1], embed, (embed,)),
        'w1': dense(keys[2], embed, (embed, mh1)), 'b1': jnp.zeros((mh1,), jnp.float32),
        'w2': dense(keys[3], mh1, (mh1, mh2)),     'b2': jnp.zeros((mh2,), jnp.float32),
        'w3': dense(keys[4], mh2, (mh2, mh3)),     'b3': jnp.zeros((mh3,), jnp.float32),
        'w4': dense(keys[5], mh3, (mh3,)),         'b4': jnp.zeros((1,), jnp.float32),
    }
    sage = {
        'ws1': dense(keys[6], in_channels, (in_channels, hidden_channels)),
        'wn1': dense(keys[7], in_channels, (in_channels, hidden_channels)),
        'b1': jnp.zeros((hidden_channels,), jnp.float32),
        'ws2': dense(keys[8], hidden_channels, (hidden_channels, hidden_channels)),
        'wn2': dense(keys[9], hidden_channels, (hidden_channels, hidden_channels)),
        'b2': jnp.zeros((hidden_channels,), jnp.float32),
        'wm1': dense(keys[10], hidden_channels, (hidden_channels, sh1)),
        'bm1': jnp.zeros((sh1,), jnp.float32),
        'wm2': dense(keys[11], sh1, (sh1, sh2)),
        'bm2': jnp.zeros((sh2,), jnp.float32),
        'wm3': dense(keys[12], sh2, (sh2,)),
        'bm3': jnp.zeros((1,), jnp.float32),
    }
    fc_w = dense(keys[13], 2, (2,))
    fc_b = jnp.zeros((1,), jnp.float32)
    return mega, sage, fc_w, fc_b


@functools.partial(jax.jit, static_argnames=('batch_size', 'num_nodes'))
def megagraphsage_forward(x, edge_index, inputs_embeds, attention_mask,
                          mega_params, sage_params, fc_w, fc_b,
                          *, batch_size, num_nodes):
    assert num_nodes >= batch_size, "sage_embeddings[:batch_size] requires N >= B"
    adj_norm = build_adjacency(edge_index, num_nodes)
    logits = fused_forward(inputs_embeds, attention_mask, x, adj_norm,
                           mega_params, sage_params, fc_w, fc_b)   # (B, 1)
    return jnp.squeeze(logits, axis=-1)                            # (B,)


if __name__ == "__main__":
    # Small shapes consistent with the module's forward signature.
    B = 4            # batch_size
    S = 8            # sequence / chunk length
    D_IN = 3         # input_dim
    EMBED = 16       # mega embedding dim (num_features)
    MH1, MH2, MH3 = 128, 64, 32   # mega MLP hiddens (hidden1/2/3, small variant)
    N = 16           # number of graph nodes
    C = 8            # in_channels
    HC = 32          # hidden_channels (small variant)
    SH1, SH2 = 128, 64            # sage MLP hiddens (hard-coded 128/64 in module)

    key = jax.random.PRNGKey(0)
    k_params, k_x, k_emb = jax.random.split(key, 3)

    mega_params, sage_params, fc_w, fc_b = init_params(
        k_params, input_dim=D_IN, embed=EMBED, mh1=MH1, mh2=MH2, mh3=MH3,
        in_channels=C, hidden_channels=HC, sh1=SH1, sh2=SH2)

    # graph node features + a bidirectional ring graph
    x = jax.random.normal(k_x, (N, C), jnp.float32)
    src = jnp.arange(N, dtype=jnp.int32)
    dst = (src + 1) % N
    edge_index = jnp.stack([jnp.concatenate([src, dst]),
                            jnp.concatenate([dst, src])], axis=0)  # (2, 2N)

    # mega branch inputs
    inputs_embeds = jax.random.normal(k_emb, (B, S, D_IN), jnp.float32)
    attention_mask = jnp.ones((B, S), jnp.int32).at[:, S - 2:].set(0)  # pad tail

    logits = megagraphsage_forward(
        x, edge_index, inputs_embeds, attention_mask,
        mega_params, sage_params, fc_w, fc_b,
        batch_size=B, num_nodes=N)
    jax.block_until_ready(logits)

    assert logits.shape == (B,), logits.shape
    assert jnp.all(jnp.isfinite(logits))
    print("KERNEL_OK")
</pallas_src>

<mosaic_0001>
module attributes {stable_mosaic.version = 11 : i64} {
  func.func private @main(%arg0: i32) attributes {dimension_semantics = [#tpu.dimension_semantics<core_parallel>], iteration_bounds = array<i64: 2>, tpu.core_type = #tpu.core_type<sc_scalar_subcore>, window_params = []} {
    return
  }
}

module attributes {stable_mosaic.version = 11 : i64} {
  func.func private @main(%arg0: i32) attributes {dimension_semantics = [#tpu.dimension_semantics<core_parallel>], iteration_bounds = array<i64: 2>, tpu.core_type = #tpu.core_type<sc_scalar_subcore>, window_params = []} {
    return
  }
}

module attributes {stable_mosaic.version = 11 : i64} {
  func.func @_fused_kernel(%arg0: memref<5xf32, #tpu.memory_space<smem>>, %arg1: memref<4x8x3xf32, #tpu.memory_space<vmem>>, %arg2: memref<4x8xf32, #tpu.memory_space<vmem>>, %arg3: memref<16x8xf32, #tpu.memory_space<vmem>>, %arg4: memref<16x16xf32, #tpu.memory_space<vmem>>, %arg5: memref<3x16xf32, #tpu.memory_space<vmem>>, %arg6: memref<16x128xf32, #tpu.memory_space<vmem>>, %arg7: memref<128x64xf32, #tpu.memory_space<vmem>>, %arg8: memref<64x32xf32, #tpu.memory_space<vmem>>, %arg9: memref<16x32xf32, #tpu.memory_space<vmem>>, %arg10: memref<64x32xf32, #tpu.memory_space<vmem>>, %arg11: memref<32x128xf32, #tpu.memory_space<vmem>>, %arg12: memref<128x64xf32, #tpu.memory_space<vmem>>, %arg13: memref<11x128xf32, #tpu.memory_space<vmem>>, %arg14: memref<4x1xf32, #tpu.memory_space<vmem>>) attributes {dimension_semantics = [], scalar_prefetch = 0 : i64, scratch_operands = 0 : i64, tpu.core_type = #tpu.core_type<tc>} {
    %c0 = arith.constant 0 : index
    %c0_0 = arith.constant 0 : index
    %0 = vector.load %arg13[%c0, %c0_0] : memref<11x128xf32, #tpu.memory_space<vmem>>, vector<1x16xf32>
    %c1 = arith.constant 1 : index
    %c0_1 = arith.constant 0 : index
    %1 = vector.load %arg13[%c1, %c0_1] : memref<11x128xf32, #tpu.memory_space<vmem>>, vector<1x16xf32>
    %c2 = arith.constant 2 : index
    %c0_2 = arith.constant 0 : index
    %2 = vector.load %arg13[%c2, %c0_2] : memref<11x128xf32, #tpu.memory_space<vmem>>, vector<1x128xf32>
    %c3 = arith.constant 3 : index
    %c0_3 = arith.constant 0 : index
    %3 = vector.load %arg13[%c3, %c0_3] : memref<11x128xf32, #tpu.memory_space<vmem>>, vector<1x64xf32>
    %c4 = arith.constant 4 : index
    %c0_4 = arith.constant 0 : index
    %4 = vector.load %arg13[%c4, %c0_4] : memref<11x128xf32, #tpu.memory_space<vmem>>, vector<1x32xf32>
    %c5 = arith.constant 5 : index
    %c0_5 = arith.constant 0 : index
    %5 = vector.load %arg13[%c5, %c0_5] : memref<11x128xf32, #tpu.memory_space<vmem>>, vector<1x32xf32>
    %c6 = arith.constant 6 : index
    %c0_6 = arith.constant 0 : index
    %6 = vector.load %arg13[%c6, %c0_6] : memref<11x128xf32, #tpu.memory_space<vmem>>, vector<1x32xf32>
    %c7 = arith.constant 7 : index
    %c0_7 = arith.constant 0 : index
    %7 = vector.load %arg13[%c7, %c0_7] : memref<11x128xf32, #tpu.memory_space<vmem>>, vector<1x32xf32>
    %c8 = arith.constant 8 : index
    %c0_8 = arith.constant 0 : index
    %8 = vector.load %arg13[%c8, %c0_8] : memref<11x128xf32, #tpu.memory_space<vmem>>, vector<1x128xf32>
    %c9 = arith.constant 9 : index
    %c0_9 = arith.constant 0 : index
    %9 = vector.load %arg13[%c9, %c0_9] : memref<11x128xf32, #tpu.memory_space<vmem>>, vector<1x64xf32>
    %c10 = arith.constant 10 : index
    %c0_10 = arith.constant 0 : index
    %10 = vector.load %arg13[%c10, %c0_10] : memref<11x128xf32, #tpu.memory_space<vmem>>, vector<1x64xf32>
    %c0_11 = arith.constant 0 : index
    %11 = memref.load %arg0[%c0_11] : memref<5xf32, #tpu.memory_space<smem>>
    %c1_12 = arith.constant 1 : index
    %12 = memref.load %arg0[%c1_12] : memref<5xf32, #tpu.memory_space<smem>>
    %c2_13 = arith.constant 2 : index
    %13 = memref.load %arg0[%c2_13] : memref<5xf32, #tpu.memory_space<smem>>
    %c3_14 = arith.constant 3 : index
    %14 = memref.load %arg0[%c3_14] : memref<5xf32, #tpu.memory_space<smem>>
    %c4_15 = arith.constant 4 : index
    %15 = memref.load %arg0[%c4_15] : memref<5xf32, #tpu.memory_space<smem>>
    %c0_16 = arith.constant 0 : index
    %c0_17 = arith.constant 0 : index
    %c0_18 = arith.constant 0 : index
    %16 = vector.load %arg1[%c0_16, %c0_17, %c0_18] : memref<4x8x3xf32, #tpu.memory_space<vmem>>, vector<4x8x3xf32>
    %c0_19 = arith.constant 0 : index
    %c0_20 = arith.constant 0 : index
    %17 = vector.load %arg2[%c0_19, %c0_20] : memref<4x8xf32, #tpu.memory_space<vmem>>, vector<4x8xf32>
    %18 = vector.shape_cast %16 : vector<4x8x3xf32> to vector<32x3xf32>
    %c0_21 = arith.constant 0 : index
    %c0_22 = arith.constant 0 : index
    %19 = vector.load %arg5[%c0_21, %c0_22] : memref<3x16xf32, #tpu.memory_space<vmem>>, vector<3x16xf32>
    %cst = arith.constant dense<0.000000e+00> : vector<32x16xf32>
    %20 = tpu.matmul %18, %19, %cst {dimension_numbers = #tpu.dot_dimension_numbers<[1], [0], [0], [1], [0, 0, 1, 1], [], []>} : vector<32x3xf32>, vector<3x16xf32>, vector<32x16xf32> -> vector<32x16xf32>
    %21 = vector.broadcast %0 : vector<1x16xf32> to vector<32x16xf32>
    %22 = arith.addf %20, %21 : vector<32x16xf32>
    %cst_23 = arith.constant 0.000000e+00 : f32
    %23 = vector.broadcast %cst_23 : f32 to vector<32x16xf32>
    %24 = arith.maximumf %22, %23 : vector<32x16xf32>
    %25 = vector.shape_cast %24 : vector<32x16xf32> to vector<4x8x16xf32>
    %26 = vector.shape_cast %1 : vector<1x16xf32> to vector<1x1x16xf32>
    %27 = vector.broadcast %26 : vector<1x1x16xf32> to vector<4x8x16xf32>
    %28 = arith.mulf %25, %27 : vector<4x8x16xf32>
    %cst_24 = arith.constant dense<0.000000e+00> : vector<4x8xf32>
    %29 = vector.multi_reduction <add>, %28, %cst_24 [2] : vector<4x8x16xf32> to vector<4x8xf32>
    %cst_25 = arith.constant 5.000000e-01 : f32
    %30 = vector.broadcast %cst_25 : f32 to vector<4x8xf32>
    %31 = arith.cmpf ogt, %17, %30 : vector<4x8xf32>
    %cst_26 = arith.constant -1.000000e+09 : f32
    %32 = vector.broadcast %cst_26 : f32 to vector<4x8xf32>
    %33 = arith.select %31, %29, %32 : vector<4x8xi1>, vector<4x8xf32>
    %cst_27 = arith.constant dense<0xFF800000> : vector<4xf32>
    %34 = vector.multi_reduction <maximumf>, %33, %cst_27 [1] : vector<4x8xf32> to vector<4xf32>
    %35 = vector.shape_cast %34 : vector<4xf32> to vector<4x1xf32>
    %36 = vector.broadcast %35 : vector<4x1xf32> to vector<4x8xf32>
    %37 = arith.subf %33, %36 : vector<4x8xf32>
    %38 = math.exp %37 : vector<4x8xf32>
    %39 = arith.mulf %38, %17 : vector<4x8xf32>
    %cst_28 = arith.constant dense<0.000000e+00> : vector<4xf32>
    %40 = vector.multi_reduction <add>, %39, %cst_28 [1] : vector<4x8xf32> to vector<4xf32>
    %41 = vector.shape_cast %40 : vector<4xf32> to vector<4x1xf32>
    %cst_29 = arith.constant 9.99999971E-10 : f32
    %42 = vector.broadcast %cst_29 : f32 to vector<4x1xf32>
    %43 = arith.addf %41, %42 : vector<4x1xf32>
    %44 = tpu.reciprocal %43 {approx = true} : vector<4x1xf32> -> vector<4x1xf32>
    %45 = vector.broadcast %44 : vector<4x1xf32> to vector<4x8xf32>
    %46 = arith.mulf %39, %45 : vector<4x8xf32>
    %47 = vector.shape_cast %46 : vector<4x8xf32> to vector<4x8x1xf32>
    %48 = vector.broadcast %47 : vector<4x8x1xf32> to vector<4x8x16xf32>
    %49 = arith.mulf %48, %25 : vector<4x8x16xf32>
    %cst_30 = arith.constant dense<0.000000e+00> : vector<4x16xf32>
    %50 = vector.multi_reduction <add>, %49, %cst_30 [1] : vector<4x8x16xf32> to vector<4x16xf32>
    %c0_31 = arith.constant 0 : index
    %c0_32 = arith.constant 0 : index
    %51 = vector.load %arg6[%c0_31, %c0_32] : memref<16x128xf32, #tpu.memory_space<vmem>>, vector<16x128xf32>
    %cst_33 = arith.constant dense<0.000000e+00> : vector<4x128xf32>
    %52 = tpu.matmul %50, %51, %cst_33 {dimension_numbers = #tpu.dot_dimension_numbers<[1], [0], [0], [1], [0, 0, 1, 1], [], []>} : vector<4x16xf32>, vector<16x128xf32>, vector<4x128xf32> -> vector<4x128xf32>
    %53 = vector.broadcast %2 : vector<1x128xf32> to vector<4x128xf32>
    %54 = arith.addf %52, %53 : vector<4x128xf32>
    %cst_34 = arith.constant 0.000000e+00 : f32
    %55 = vector.broadcast %cst_34 : f32 to vector<4x128xf32>
    %56 = arith.maximumf %54, %55 : vector<4x128xf32>
    %c0_35 = arith.constant 0 : index
    %c0_36 = arith.constant 0 : index
    %57 = vector.load %arg7[%c0_35, %c0_36] : memref<128x64xf32, #tpu.memory_space<vmem>>, vector<128x64xf32>
    %cst_37 = arith.constant dense<0.000000e+00> : vector<4x64xf32>
    %58 = tpu.matmul %56, %57, %cst_37 {dimension_numbers = #tpu.dot_dimension_numbers<[1], [0], [0], [1], [0, 0, 1, 1], [], []>} : vector<4x128xf32>, vector<128x64xf32>, vector<4x64xf32> -> vector<4x64xf32>
    %59 = vector.broadcast %3 : vector<1x64xf32> to vector<4x64xf32>
    %60 = arith.addf %58, %59 : vector<4x64xf32>
    %cst_38 = arith.constant 0.000000e+00 : f32
    %61 = vector.broadcast %cst_38 : f32 to vector<4x64xf32>
    %62 = arith.maximumf %60, %61 : vector<4x64xf32>
    %c0_39 = arith.constant 0 : index
    %c0_40 = arith.constant 0 : index
    %63 = vector.load %arg8[%c0_39, %c0_40] : memref<64x32xf32, #tpu.memory_space<vmem>>, vector<64x32xf32>
    %cst_41 = arith.constant dense<0.000000e+00> : vector<4x32xf32>
    %64 = tpu.matmul %62, %63, %cst_41 {dimension_numbers = #tpu.dot_dimension_numbers<[1], [0], [0], [1], [0, 0, 1, 1], [], []>} : vector<4x64xf32>, vector<64x32xf32>, vector<4x32xf32> -> vector<4x32xf32>
    %65 = vector.broadcast %4 : vector<1x32xf32> to vector<4x32xf32>
    %66 = arith.addf %64, %65 : vector<4x32xf32>
    %cst_42 = arith.constant 0.000000e+00 : f32
    %67 = vector.broadcast %cst_42 : f32 to vector<4x32xf32>
    %68 = arith.maximumf %66, %67 : vector<4x32xf32>
    %69 = vector.broadcast %5 : vector<1x32xf32> to vector<4x32xf32>
    %70 = arith.mulf %68, %69 : vector<4x32xf32>
    %cst_43 = arith.constant dense<0.000000e+00> : vector<4xf32>
    %71 = vector.multi_reduction <add>, %70, %cst_43 [1] : vector<4x32xf32> to vector<4xf32>
    %72 = vector.shape_cast %71 : vector<4xf32> to vector<4x1xf32>
    %73 = vector.broadcast %11 : f32 to vector<4x1xf32>
    %74 = arith.addf %72, %73 : vector<4x1xf32>
    %c0_44 = arith.constant 0 : index
    %c0_45 = arith.constant 0 : index
    %75 = vector.load %arg3[%c0_44, %c0_45] : memref<16x8xf32, #tpu.memory_space<vmem>>, vector<16x8xf32>
    %c0_46 = arith.constant 0 : index
    %c0_47 = arith.constant 0 : index
    %76 = vector.load %arg4[%c0_46, %c0_47] : memref<16x16xf32, #tpu.memory_space<vmem>>, vector<16x16xf32>
    %cst_48 = arith.constant dense<0.000000e+00> : vector<16x8xf32>
    %77 = tpu.matmul %76, %75, %cst_48 {dimension_numbers = #tpu.dot_dimension_numbers<[1], [0], [0], [1], [0, 0, 1, 1], [], []>} : vector<16x16xf32>, vector<16x8xf32>, vector<16x8xf32> -> vector<16x8xf32>
    %78 = tpu.concatenate %75, %77 in 1 : vector<16x8xf32>, vector<16x8xf32> -> vector<16x16xf32>
    %c0_49 = arith.constant 0 : index
    %c0_50 = arith.constant 0 : index
    %79 = vector.load %arg9[%c0_49, %c0_50] : memref<16x32xf32, #tpu.memory_space<vmem>>, vector<16x32xf32>
    %cst_51 = arith.constant dense<0.000000e+00> : vector<16x32xf32>
    %80 = tpu.matmul %78, %79, %cst_51 {dimension_numbers = #tpu.dot_dimension_numbers<[1], [0], [0], [1], [0, 0, 1, 1], [], []>} : vector<16x16xf32>, vector<16x32xf32>, vector<16x32xf32> -> vector<16x32xf32>
    %81 = vector.broadcast %6 : vector<1x32xf32> to vector<16x32xf32>
    %82 = arith.addf %80, %81 : vector<16x32xf32>
    %cst_52 = arith.constant 0.000000e+00 : f32
    %83 = vector.broadcast %cst_52 : f32 to vector<16x32xf32>
    %84 = arith.maximumf %82, %83 : vector<16x32xf32>
    %cst_53 = arith.constant dense<0.000000e+00> : vector<16x32xf32>
    %85 = tpu.matmul %76, %84, %cst_53 {dimension_numbers = #tpu.dot_dimension_numbers<[1], [0], [0], [1], [0, 0, 1, 1], [], []>} : vector<16x16xf32>, vector<16x32xf32>, vector<16x32xf32> -> vector<16x32xf32>
    %86 = tpu.concatenate %84, %85 in 1 : vector<16x32xf32>, vector<16x32xf32> -> vector<16x64xf32>
    %c0_54 = arith.constant 0 : index
    %c0_55 = arith.constant 0 : index
    %87 = vector.load %arg10[%c0_54, %c0_55] : memref<64x32xf32, #tpu.memory_space<vmem>>, vector<64x32xf32>
    %cst_56 = arith.constant dense<0.000000e+00> : vector<16x32xf32>
    %88 = tpu.matmul %86, %87, %cst_56 {dimension_numbers = #tpu.dot_dimension_numbers<[1], [0], [0], [1], [0, 0, 1, 1], [], []>} : vector<16x64xf32>, vector<64x32xf32>, vector<16x32xf32> -> vector<16x32xf32>
    %89 = vector.broadcast %7 : vector<1x32xf32> to vector<16x32xf32>
    %90 = arith.addf %88, %89 : vector<16x32xf32>
    %cst_57 = arith.constant 0.000000e+00 : f32
    %91 = vector.broadcast %cst_57 : f32 to vector<16x32xf32>
    %92 = arith.maximumf %90, %91 : vector<16x32xf32>
    %c0_58 = arith.constant 0 : index
    %c0_59 = arith.constant 0 : index
    %93 = vector.load %arg11[%c0_58, %c0_59] : memref<32x128xf32, #tpu.memory_space<vmem>>, vector<32x128xf32>
    %cst_60 = arith.constant dense<0.000000e+00> : vector<16x128xf32>
    %94 = tpu.matmul %92, %93, %cst_60 {dimension_numbers = #tpu.dot_dimension_numbers<[1], [0], [0], [1], [0, 0, 1, 1], [], []>} : vector<16x32xf32>, vector<32x128xf32>, vector<16x128xf32> -> vector<16x128xf32>
    %95 = vector.broadcast %8 : vector<1x128xf32> to vector<16x128xf32>
    %96 = arith.addf %94, %95 : vector<16x128xf32>
    %cst_61 = arith.constant 0.000000e+00 : f32
    %97 = vector.broadcast %cst_61 : f32 to vector<16x128xf32>
    %98 = arith.maximumf %96, %97 : vector<16x128xf32>
    %c0_62 = arith.constant 0 : index
    %c0_63 = arith.constant 0 : index
    %99 = vector.load %arg12[%c0_62, %c0_63] : memref<128x64xf32, #tpu.memory_space<vmem>>, vector<128x64xf32>
    %cst_64 = arith.constant dense<0.000000e+00> : vector<16x64xf32>
    %100 = tpu.matmul %98, %99, %cst_64 {dimension_numbers = #tpu.dot_dimension_numbers<[1], [0], [0], [1], [0, 0, 1, 1], [], []>} : vector<16x128xf32>, vector<128x64xf32>, vector<16x64xf32> -> vector<16x64xf32>
    %101 = vector.broadcast %9 : vector<1x64xf32> to vector<16x64xf32>
    %102 = arith.addf %100, %101 : vector<16x64xf32>
    %cst_65 = arith.constant 0.000000e+00 : f32
    %103 = vector.broadcast %cst_65 : f32 to vector<16x64xf32>
    %104 = arith.maximumf %102, %103 : vector<16x64xf32>
    %105 = vector.broadcast %10 : vector<1x64xf32> to vector<16x64xf32>
    %106 = arith.mulf %104, %105 : vector<16x64xf32>
    %cst_66 = arith.constant dense<0.000000e+00> : vector<16xf32>
    %107 = vector.multi_reduction <add>, %106, %cst_66 [1] : vector<16x64xf32> to vector<16xf32>
    %108 = vector.shape_cast %107 : vector<16xf32> to vector<16x1xf32>
    %109 = vector.broadcast %12 : f32 to vector<16x1xf32>
    %110 = arith.addf %108, %109 : vector<16x1xf32>
    %111 = vector.broadcast %13 : f32 to vector<4x1xf32>
    %112 = arith.mulf %74, %111 : vector<4x1xf32>
    %113 = vector.extract_strided_slice %110 {offsets = [0, 0], sizes = [4, 1], strides = [1, 1]} : vector<16x1xf32> to vector<4x1xf32>
    %114 = vector.broadcast %14 : f32 to vector<4x1xf32>
    %115 = arith.mulf %113, %114 : vector<4x1xf32>
    %116 = arith.addf %112, %115 : vector<4x1xf32>
    %117 = vector.broadcast %15 : f32 to vector<4x1xf32>
    %118 = arith.addf %116, %117 : vector<4x1xf32>
    %c0_67 = arith.constant 0 : index
    %c0_68 = arith.constant 0 : index
    %119 = vector.load %arg14[%c0_67, %c0_68] : memref<4x1xf32, #tpu.memory_space<vmem>>, vector<4x1xf32>
    tpu.vector_store %arg14[%c0_67, %c0_68], %118 {strides = array<i32>} : memref<4x1xf32, #tpu.memory_space<vmem>>, vector<4x1xf32>,
    return
  }
}

</mosaic_0001>

<bundles_post_ra>
// kernel: megagraphsage_forward.1
= control target key start
LH: loop header
LB: loop body
LE: loop exit
PB: predicated region body
PF: predicated region fallthrough
CT: control target
= control target key end

     0   :  { %19 = vsyncpa [#allocation3], 0  ;;  %s1961_s0 = inlined_call_operand.vmem [shape: f32[5], index: 0, kind: input, shape index: {}]   ;;  %s1962_s1 = inlined_call_operand.vmem [shape: f32[4,8,3], index: 1, kind: input, shape index: {}]   ;;  %s1963_s2 = inlined_call_operand.vmem [shape: f32[4,8], index: 2, kind: input, shape index: {}]   ;;  %s1964_s3 = inlined_call_operand.vmem [shape: f32[16,8], index: 3, kind: input, shape index: {}]   ;;  %s1965_s4 = inlined_call_operand.vmem [shape: f32[16,16], index: 4, kind: input, shape index: {}]   ;;  %s1966_s5 = inlined_call_operand.vmem [shape: f32[3,16], index: 5, kind: input, shape index: {}]   ;;  %s1967_s6 = inlined_call_operand.vmem [shape: f32[16,128], index: 6, kind: input, shape index: {}]   ;;  %s1968_s7 = inlined_call_operand.vmem [shape: f32[128,64], index: 7, kind: input, shape index: {}]   ;;  %s1969_s8 = inlined_call_operand.vmem [shape: f32[64,32], index: 8, kind: input, shape index: {}]   ;;  %s1970_s9 = inlined_call_operand.vmem [shape: f32[16,32], index: 9, kind: input, shape index: {}]   ;;  %s1971_s10 = inlined_call_operand.vmem [shape: f32[64,32], index: 10, kind: input, shape index: {}]   ;;  %s1972_s11 = inlined_call_operand.vmem [shape: f32[32,128], index: 11, kind: input, shape index: {}]   ;;  %s1973_s12 = inlined_call_operand.vmem [shape: f32[128,64], index: 12, kind: input, shape index: {}]   ;;  %s1974_s13 = inlined_call_operand.vmem [shape: f32[11,128], index: 13, kind: input, shape index: {}]   ;;  %s1975_s14 = inlined_call_operand.vmem [shape: f32[4,1], index: 14, kind: output, shape index: {}]  }
   0x1   :  { %s26_s15 = sshll.u32 %s1961_s0, 4  ;;  %s27_s15 = int_to_ptr.vmem [resolvable:$true] %s26_s15 }
   0x2   :  { %s1553_s16 = scalar_lea.vmem %s27_s15, 16  ;;  %p1558_p1 = scmp.lt.s32.totalorder %s27_s15, %s27_s15 }
   0x3   :  { %p1554_p0 = scmp.ne.s32.totalorder %s27_s15, %s1553_s16  ;;  %p1559_p2 = scmp.lt.s32.totalorder %s1553_s16, %s1553_s16 }
   0x5   :  { %p1560_p3 = por %p1559_p2, %p1558_p1 }
   0x7   :  { %p1561_p4 = pnand %p1560_p3, %p1554_p0 }
   0x9   :  { %1564 = shalt.err (!%p1561_p4)
}
   0xa   :  { %s1567_s17 = smov [#allocation2]  }
   0xb   :  { %29 = dma.vmem_to_smem %s27_s15, 16, %s1567_s17, [#allocation3]  }
   0xc   :  { %1565 = dma.done.wait [#allocation3], 16  }
   0xd   :  { %1566 = vsyncadd [#allocation3], 4294967280 }
   0xe   :  { %59 = sfence }
   0xf   :  { %v81_v0 = vld [vmem:[%s1966_s5] sm:$0x7]  ;;  %vm99_vm0 = vcmask 1042432   ;;  %vm86_vm1 = vcmask 23552   ;;  %v77_v2 = vld [vmem:[%s1962_s1 + $0x8] sm:$0xff]  ;;  %v78_v3 = vld [vmem:[%s1962_s1 + $0x10] sm:$0xff]  ;;  %v218_v27 = vlaneseq }
  0x10   :  { %v76_v1 = vld [vmem:[%s1962_s1] sm:$0xff]  ;;  %1281 = vmatprep.subr.msk.mxu1 %vm99_vm0, %v81_v0  ;;  %v79_v4 = vld [vmem:[%s1962_s1 + $0x18] sm:$0xff]  ;;  %vm200_vm2 = vcmask 130048   ;;  %vm236_vm3 = vcmask 1041409   ;;  %vm238_vm4 = vcmask 1042434   ;;  %vm240_vm5 = vcmask 1043459  }
  0x11   :  { %1283 = vmatprep.mubr.msk.f32.mxu1 %vm86_vm1, %v76_v1  ;;  %1282 = vmatpush3.msk.msra.mxu1 %vm99_vm0, %v81_v0  ;;  %v1173_v5 = vld [vmem:[%s1974_s13] ss:$0 sm:$0xff]  ;;  %v1179_v10 = vld [vmem:[%s1974_s13 + $0x1] ss:$0 sm:$0xff]  ;;  %v219_v28 = vand.u32 127, %v218_v27  ;;  %v221_v29 = vshrl.u32 %v218_v27, 7 }
  0x12   :  { %1284 = vmatmul.mubr.msk.f32.vlgmr.msra.gmra.mrb[0].mxu1 %vm86_vm1, %v77_v2  ;;  %v80_v37 = vld [vmem:[%s1963_s2] sm:$0xf]  ;;  %vm244_vm7 = vcmask 60416   ;;  %v319_v63 = vld [vmem:[%s1967_s6 + $0x8] sm:$0xff]  ;;  %v1568_v2 = vmov 0.0|0.0   ;;  %vm1569_vm8 = vmmov 0  }
  0x13   :  { %1286 = vmatprep.mubr.msk.f32.mxu1 %vm86_vm1, %v78_v3  ;;  %v222_v31 = vsub.s32 %v219_v28, %v221_v29  ;;  %vm213_vm6 = vcmp.gt.f32.partialorder %v80_v37, 0.5  ;;  %v267_v53 = vsub.s32 1, %v221_v29  ;;  %v260_v54 = vsub.s32 0, %v221_v29  ;;  %v318_v62 = vld [vmem:[%s1967_s6] sm:$0xff]  ;;  %1436 = vmatprep.subr.bf16.mxu1 %v1568_v2  ;;  %v414_v27 = vld [vmem:[%s1968_s7 + $0x50] sm:$0xff]  ;;  %v415_v28 = vld [vmem:[%s1968_s7 + $0x58] sm:$0xff] }
  0x14   :  { %v274_v59 = vsub.s32 2, %v221_v29  ;;  %v281_v61 = vsub.s32 3, %v221_v29  ;;  %v1437_v1 = vpack.c.bf16 %v319_v63, %v318_v62  ;;  %1439 = vmatprep.subr.bf16.mxu0 %v1568_v2  ;;  %v1570_v3 = vmov 0.0   ;;  %s1572_s28 = smov 32   ;;  %s71_s25 = sld [smem:[#allocation2]] }
  0x15   :  { %1328 = vmatprep.mubr.msk.f32.mxu0 %vm1569_vm8, %v1570_v3  ;;  %v1455_v29 = vpack.c.bf16 %v415_v28, %v414_v27  ;;  %v502_v27 = vld [vmem:[%s1969_s8 + $0x38] sm:$0xff]  ;;  %vm507_vm9 = vcmask 523264   ;;  %vm686_vm10 = vcmask 64512   ;;  %vm587_vm11 = vcmask 257024   ;;  %s1169_s26 = sld [smem:[#allocation2 + $0x1]]  ;;  %s1170_s27 = sld [smem:[#allocation2 + $0x2]] }
  0x16   :  { %1287 = vmatmul.mubr.msk.f32.gmra.mrb[2].mxu1 %vm86_vm1, %v79_v4  ;;  %v404_v4 = vld [vmem:[%s1968_s7] sm:$0xff]  ;;  %vm861_vm12 = vcmask 261120   ;;  %vm1162_vm13 = vcmask 3072  }
  0x17   :  { %1438 = vmatpush3.bf16.msra.mxu1 %v1437_v1  ;;  %1293 = vmatprep.mubr.msk.f32.mxu1 %vm1569_vm8, %v1570_v3  ;;  %v419_v1 = vld [vmem:[%s1968_s7 + $0x78] sm:$0xff] }
  0x18   :  { %1463 = vmatprep.subr.bf16.mxu1 %v1568_v2 }
  0xe5   :  { %v1285_v6 = vpop.f32.mrb[0].mxu1 }
  0xe6   :  { %v1669_v7 = vadd.f32 %v1285_v6, %v1173_v5  ;;  %v169_v8 = vpop.f32.mrb[1].mxu1  ;;  %v406_v6 = vld [vmem:[%s1968_s7 + $0x10] sm:$0xff] }
  0xe7   :  { %v1671_v9 = vadd.f32 %v1173_v5, %v169_v8 }
  0xe8   :  { %v189_v11 = vmax.f32 %v1669_v7, 0.0 }
  0xe9   :  { %v188_v12 = vmax.f32 %v1671_v9, 0.0  ;;  %v1288_v13 = vpop.f32.mrb[2].mxu1 }
  0xea   :  { %v1678_v14 = vadd.f32 %v1288_v13, %v1173_v5  ;;  %v179_v15 = vpop.f32.mrb[3].mxu1  ;;  %v197_v21 = vmul.f32 %v1179_v10, %v189_v11 }
  0xeb   :  { %v1680_v16 = vadd.f32 %v1173_v5, %v179_v15  ;;  %v196_v17 = vmul.f32 %v1179_v10, %v188_v12  ;;  %v405_v5 = vld [vmem:[%s1968_s7 + $0x8] sm:$0xff]  ;;  %v408_v15 = vld [vmem:[%s1968_s7 + $0x20] sm:$0xff] }
  0xec   :  { %v191_v18 = vmax.f32 %v1678_v14, 0.0  ;;  %v204_v24 = vsel %vm200_vm2, %v197_v21, 0.0  ;;  %v1440_v8 = vpack.c.bf16 %v405_v5, %v404_v4  ;;  %v410_v21 = vld [vmem:[%s1968_s7 + $0x30] sm:$0xff]  ;;  %v495_v5 = vld [vmem:[%s1969_s8] sm:$0xff] }
  0xed   :  { %v190_v19 = vmax.f32 %v1680_v16, 0.0  ;;  %v201_v20 = vsel %vm200_vm2, %v196_v17, 0.0  ;;  %v409_v17 = vld [vmem:[%s1968_s7 + $0x28] sm:$0xff] }
  0xee   :  { %202 = vadd.xlane.f32.xlu0 %v201_v20  ;;  %v199_v25 = vmul.f32 %v1179_v10, %v191_v18  ;;  %1441 = vmatpush3.bf16.msra.mxu0 %v1440_v8  ;;  %v1446_v20 = vpack.c.bf16 %v409_v17, %v408_v15  ;;  %v499_v15 = vld [vmem:[%s1969_s8 + $0x20] sm:$0xff]  ;;  %v500_v17 = vld [vmem:[%s1969_s8 + $0x28] sm:$0xff] }
  0xef   :  { %v198_v22 = vmul.f32 %v1179_v10, %v190_v19  ;;  %v407_v10 = vld [vmem:[%s1968_s7 + $0x18] sm:$0xff]  ;;  %1442 = vmatprep.subr.bf16.mxu0 %v1568_v2 }
  0xf0   :  { %v210_v26 = vsel %vm200_vm2, %v199_v25, 0.0  ;;  %v1443_v13 = vpack.c.bf16 %v407_v10, %v406_v6  ;;  %v413_v25 = vld [vmem:[%s1968_s7 + $0x48] sm:$0xff]  ;;  %v498_v10 = vld [vmem:[%s1969_s8 + $0x18] sm:$0xff] }
  0xf1   :  { %v207_v23 = vsel %vm200_vm2, %v198_v22, 0.0  ;;  %v411_v22 = vld [vmem:[%s1968_s7 + $0x38] sm:$0xff]  ;;  %v496_v6 = vld [vmem:[%s1969_s8 + $0x8] sm:$0xff] }
  0xf2   :  { %208 = vadd.xlane.f32.xlu1 %v207_v23  ;;  %205 = vadd.xlane.f32.xlu0 %v204_v24  ;;  %v1449_v23 = vpack.c.bf16 %v411_v22, %v410_v21  ;;  %v412_v24 = vld [vmem:[%s1968_s7 + $0x40] sm:$0xff]  ;;  %v1464_v8 = vpack.c.bf16 %v496_v6, %v495_v5 }
  0xf3   :  { %1444 = vmatpush3.bf16.msra.mxu0 %v1443_v13  ;;  %v1180_v21 = vld [vmem:[%s1974_s13 + $0x2] ss:$0 sm:$0xff] }
  0xf4   :  { %1445 = vmatprep.subr.bf16.mxu0 %v1568_v2 }
  0xf6   :  { %211 = vadd.xlane.f32.xlu1 %v210_v26  ;;  %v1452_v26 = vpack.c.bf16 %v413_v25, %v412_v24 }
  0xf7   :  { %1447 = vmatpush3.bf16.msra.mxu0 %v1446_v20  ;;  %v1470_v20 = vpack.c.bf16 %v500_v17, %v499_v15 }
  0xf8   :  { %1448 = vmatprep.subr.bf16.mxu0 %v1568_v2 }
  0xfb   :  { %1450 = vmatpush3.bf16.msra.mxu0 %v1449_v23 }
  0xfc   :  { %1451 = vmatprep.subr.bf16.mxu0 %v1568_v2 }
  0xff   :  { %1453 = vmatpush3.bf16.msra.mxu0 %v1452_v26  ;;  %v501_v26 = vld [vmem:[%s1969_s8 + $0x30] sm:$0xff] }
 0x100   :  { %1454 = vmatprep.subr.bf16.mxu0 %v1568_v2  ;;  %v1473_v28 = vpack.c.bf16 %v502_v27, %v501_v26  ;;  %v1052_v26 = vld [vmem:[%s1973_s12 + $0x10] sm:$0xff] }
 0x103   :  { %1456 = vmatpush3.bf16.msra.mxu0 %v1455_v29  ;;  %v594_v29 = vld [vmem:[%s1964_s3 + $0x8] sm:$0xff] }
 0x104   :  { %1457 = vmatprep.subr.bf16.mxu0 %v1568_v2 }
 0x17b   :  { %v203_v30 = vpop.xlane.xlu0 %202 }
 0x17c   :  { %v223_v34 = vrot.slane %v203_v30, %v222_v31  ;;  %v416_v30 = vld [vmem:[%s1968_s7 + $0x60] sm:$0xff] }
 0x17f   :  { %v209_v32 = vpop.xlane.xlu1 %208  ;;  %v206_v33 = vpop.xlane.xlu0 %205 }
 0x180   :  { %v227_v35 = vrot.slane %v206_v33, %v222_v31  ;;  %v231_v36 = vrot.slane %v209_v32, %v222_v31 }
 0x182   :  { %v237_v38 = vsel %vm236_vm3, %v227_v35, %v223_v34 }
 0x183   :  { %v212_v39 = vpop.xlane.xlu1 %211  ;;  %v239_v41 = vsel %vm238_vm4, %v231_v36, %v237_v38 }
 0x184   :  { %v235_v40 = vrot.slane %v212_v39, %v222_v31  ;;  %v417_v31 = vld [vmem:[%s1968_s7 + $0x68] sm:$0xff] }
 0x185   :  { %v1458_v32 = vpack.c.bf16 %v417_v31, %v416_v30  ;;  %v1182_v31 = vld [vmem:[%s1974_s13 + $0x3] ss:$0 sm:$0xff] }
 0x186   :  { %v241_v42 = vsel %vm240_vm5, %v235_v40, %v239_v41 }
 0x187   :  { %v243_v43 = vsel %vm213_vm6, %v241_v42, -1e+09  ;;  %1459 = vmatpush3.bf16.msra.mxu0 %v1458_v32 }
 0x188   :  { %v245_v44 = vsel %vm244_vm7, %v243_v43, -inf  ;;  %1460 = vmatprep.subr.bf16.mxu0 %v1568_v2 }
 0x189   :  { %246 = vmax.xlane.f32.xlu0 %v245_v44 }
 0x216   :  { %v247_v45 = vpop.xlane.xlu0 %246 }
 0x217   :  { %v248_v46 = vsub.f32 %v243_v43, %v247_v45 }
 0x219   :  { %v249_v47 = vmul.f32 1.442695, %v248_v46 }
 0x21b   :  { %1549 = vpow2.f32 %v249_v47 }
 0x225   :  { %v1550_v48 = vpop.eup %1549 }
 0x226   :  { %v251_v49 = vmul.f32 %v1550_v48, %v80_v37 }
 0x228   :  { %v252_v50 = vsel %vm244_vm7, %v251_v49, 0.0 }
 0x229   :  { %253 = vadd.xlane.f32.xlu1 %v252_v50 }
 0x2b6   :  { %v254_v51 = vpop.xlane.xlu1 %253 }
 0x2b7   :  { %v255_v52 = vadd.f32 1e-09, %v254_v51 }
 0x2b9   :  { %1551 = vrcp.f32 %v255_v52 }
 0x2c3   :  { %v1552_v55 = vpop.eup %1551 }
 0x2c4   :  { %v257_v56 = vmul.f32 %v1552_v55, %v251_v49 }
 0x2c6   :  { %v268_v57 = vrot.slane %v257_v56, %v267_v53  ;;  %v261_v58 = vrot.slane %v257_v56, %v260_v54  ;;  %v275_v60 = vrot.slane %v257_v56, %v274_v59  ;;  %v282_v0 = vrot.slane %v257_v56, %v281_v61 }
 0x2c8   :  { %270 = vbcast.lane.b32.xlu1 %v268_v57, 256  ;;  %263 = vbcast.lane.b32.xlu0 %v261_v58, 256 }
 0x2cc   :  { %277 = vbcast.lane.b32.xlu1 %v275_v60, 256 }
 0x2d0   :  { %284 = vbcast.lane.b32.xlu1 %v282_v0, 256  ;;  %v418_v0 = vld [vmem:[%s1968_s7 + $0x70] sm:$0xff]  ;;  %s1571_s7 = smov 8  }
 0x2d1   :  { %v1461_v4 = vpack.c.bf16 %v419_v1, %v418_v0 }
 0x2d3   :  { %1462 = vmatpush3.bf16.msra.mxu0 %v1461_v4  ;;  %v1185_v4 = vld [vmem:[%s1974_s13 + $0x5] ss:$0 sm:$0xff] }
 0x33a   :  { %v271_v33 = vpop.permute.xlu1 %270  ;;  %v264_v34 = vpop.permute.xlu0 %263 }
 0x33b   :  { %v287_v35 = vmul.f32 %v271_v33, %v189_v11  ;;  %v286_v36 = vmul.f32 %v264_v34, %v188_v12 }
 0x33d   :  { %v297_v37 = vsel %vm200_vm2, %v287_v35, 0.0  ;;  %v290_v38 = vsel %vm200_vm2, %v286_v36, 0.0  ;;  %v595_v36 = vld [vmem:[%s1965_s4] sm:$0xff] }
 0x33e   :  { %v298_v39 = vrot.slane %v297_v37, 4  ;;  %v291_v40 = vrot.slane %v290_v38, 4  ;;  %v278_v41 = vpop.permute.xlu1 %277 }
 0x33f   :  { %v288_v42 = vmul.f32 %v278_v41, %v190_v19 }
 0x340   :  { %v299_v43 = vadd.f32 %v298_v39, %v297_v37  ;;  %v292_v44 = vadd.f32 %v291_v40, %v290_v38  ;;  %v596_v37 = vld [vmem:[%s1965_s4 + $0x8] sm:$0xff]  ;;  %v689_v38 = vld [vmem:[%s1970_s9] sm:$0xff] }
 0x341   :  { %v304_v45 = vsel %vm200_vm2, %v288_v42, 0.0  ;;  %v690_v39 = vld [vmem:[%s1970_s9 + $0x8] sm:$0xff] }
 0x342   :  { %v300_v46 = vrot.slane %v299_v43, 2  ;;  %v293_v7 = vrot.slane %v292_v44, 2  ;;  %v305_v11 = vrot.slane %v304_v45, 4  ;;  %v285_v47 = vpop.permute.xlu1 %284  ;;  %v1479_v40 = vpack.c.bf16 %v690_v39, %v689_v38  ;;  %v1060_v38 = vld [vmem:[%s1973_s12 + $0x50] sm:$0xff]  ;;  %v1061_v39 = vld [vmem:[%s1973_s12 + $0x58] sm:$0xff] }
 0x343   :  { %v289_v9 = vmul.f32 %v285_v47, %v191_v18  ;;  %v1188_v47 = vld [vmem:[%s1974_s13 + $0x6] ss:$0 sm:$0xff] }
 0x344   :  { %v301_v12 = vadd.f32 %v300_v46, %v299_v43  ;;  %v294_v48 = vadd.f32 %v293_v7, %v292_v44  ;;  %v306_v49 = vadd.f32 %v305_v11, %v304_v45 }
 0x345   :  { %v311_v50 = vsel %vm200_vm2, %v289_v9, 0.0 }
 0x346   :  { %v307_v51 = vrot.slane %v306_v49, 2  ;;  %v312_v52 = vrot.slane %v311_v50, 4  ;;  %v302_v16 = vrot.slane %v301_v12, 1  ;;  %v295_v19 = vrot.slane %v294_v48, 1 }
 0x348   :  { %v308_v53 = vadd.f32 %v307_v51, %v306_v49  ;;  %v313_v54 = vadd.f32 %v312_v52, %v311_v50  ;;  %v303_v57 = vadd.f32 %v302_v16, %v301_v12  ;;  %v296_v58 = vadd.f32 %v295_v19, %v294_v48  ;;  %v864_v16 = vld [vmem:[%s1971_s10] sm:$0xff]  ;;  %v865_v19 = vld [vmem:[%s1971_s10 + $0x8] sm:$0xff] }
 0x34a   :  { %v309_v55 = vrot.slane %v308_v53, 1  ;;  %v314_v56 = vrot.slane %v313_v54, 2  ;;  %v328_v14 = vsel %vm236_vm3, %v303_v57, %v296_v58  ;;  %v868_v57 = vld [vmem:[%s1971_s10 + $0x20] sm:$0xff]  ;;  %v869_v58 = vld [vmem:[%s1971_s10 + $0x28] sm:$0xff] }
 0x34c   :  { %v315_v59 = vadd.f32 %v314_v56, %v313_v54  ;;  %v310_v60 = vadd.f32 %v309_v55, %v308_v53  ;;  %v866_v53 = vld [vmem:[%s1971_s10 + $0x10] sm:$0xff]  ;;  %v1487_v54 = vpack.c.bf16 %v865_v19, %v864_v16  ;;  %v867_v55 = vld [vmem:[%s1971_s10 + $0x18] sm:$0xff] }
 0x34d   :  { %v1491_v56 = vpack.c.bf16 %v867_v55, %v866_v53  ;;  %v1199_v55 = vld [vmem:[%s1974_s13 + $0x9] ss:$0 sm:$0xff] }
 0x34e   :  { %v316_v61 = vrot.slane %v315_v59, 1  ;;  %v329_v62 = vsel %vm238_vm4, %v310_v60, %v328_v14  ;;  %v870_v60 = vld [vmem:[%s1971_s10 + $0x30] sm:$0xff] }
 0x350   :  { %v317_v18 = vadd.f32 %v316_v61, %v315_v59  ;;  %v1495_v59 = vpack.c.bf16 %v869_v58, %v868_v57  ;;  %v871_v61 = vld [vmem:[%s1971_s10 + $0x38] sm:$0xff] }
 0x351   :  { %v1499_v14 = vpack.c.bf16 %v871_v61, %v870_v60 }
 0x352   :  { %v330_v63 = vsel %vm240_vm5, %v317_v18, %v329_v62 }
 0x353   :  { %1294 = vmatmul.mubr.msk.f32.vlgmr.msra.gmra.mrb[4].mxu1 %vm200_vm2, %v330_v63  ;;  %v1183_v63 = vld [vmem:[%s1974_s13 + $0x4] ss:$0 sm:$0xff] }
 0x354   :  { %1347 = vmatprep.mubr.msk.f32.mxu1 %vm1569_vm8, %v1570_v3  ;;  %v497_v3 = vld [vmem:[%s1969_s8 + $0x10] sm:$0xff]  ;;  %1465 = vmatpush3.bf16.msra.mxu1 %v1464_v8  ;;  %v960_v8 = vld [vmem:[%s1972_s11 + $0x8] sm:$0xff]  ;;  %s1171_s8 = sld [smem:[#allocation2 + $0x3]] }
 0x355   :  { %v1467_v13 = vpack.c.bf16 %v498_v10, %v497_v3  ;;  %1466 = vmatprep.subr.bf16.mxu1 %v1568_v2  ;;  %v959_v3 = vld [vmem:[%s1972_s11] sm:$0xff] }
 0x356   :  { %v1503_v10 = vpack.c.bf16 %v960_v8, %v959_v3 }
 0x358   :  { %1468 = vmatpush3.bf16.msra.mxu1 %v1467_v13 }
 0x359   :  { %1469 = vmatprep.subr.bf16.mxu1 %v1568_v2 }
 0x35c   :  { %1471 = vmatpush3.bf16.msra.mxu1 %v1470_v20 }
 0x35d   :  { %1472 = vmatprep.subr.bf16.mxu1 %v1568_v2  ;;  %v593_v2 = vld [vmem:[%s1964_s3] sm:$0xff] }
 0x35e   :  { %v1475_v30 = vpack.c.bf16 %v594_v29, %v593_v2 }
 0x360   :  { %1474 = vmatpush3.bf16.msra.mxu1 %v1473_v28  ;;  %v1053_v28 = vld [vmem:[%s1973_s12 + $0x18] sm:$0xff] }
 0x361   :  { %1476 = vmatprep.subr.bf16.mxu1 %v1475_v30 }
 0x426   :  { %v399_v22 = vpop.f32.mrb[4].mxu1 }
 0x427   :  { %v400_v23 = vadd.f32 %v1180_v21, %v399_v22  ;;  %v1295_v24 = vpop.f32.mrb[5].mxu1  ;;  %v961_v21 = vld [vmem:[%s1972_s11 + $0x10] sm:$0xff]  ;;  %v962_v22 = vld [vmem:[%s1972_s11 + $0x18] sm:$0xff] }
 0x428   :  { %v1050_v24 = vld [vmem:[%s1973_s12] sm:$0xff] }
 0x429   :  { %v403_v25 = vmax.f32 %v400_v23, 0.0  ;;  %v1507_v23 = vpack.c.bf16 %v962_v22, %v961_v21 }
 0x42b   :  { %1329 = vmatmul.mubr.f32.vlgmr.msra.gmra.mrb[0].mxu0 %v403_v25  ;;  %v1051_v25 = vld [vmem:[%s1973_s12 + $0x8] sm:$0xff] }
 0x42c   :  { %v1511_v27 = vpack.c.bf16 %v1051_v25, %v1050_v24 }
 0x42e   :  { %1512 = vmatprep.subr.bf16.mxu0 %v1511_v27 }
 0x42f   :  { %1514 = vmatpush3.bf16.msra.mxu0 %v1511_v27 }
 0x4fe   :  { %v490_v32 = vpop.f32.mrb[0].mxu0 }
 0x4ff   :  { %v491_v33 = vadd.f32 %v1182_v31, %v490_v32  ;;  %v1330_v34 = vpop.f32.mrb[1].mxu0  ;;  %v1056_v32 = vld [vmem:[%s1973_s12 + $0x30] sm:$0xff] }
 0x501   :  { %v494_v35 = vmax.f32 %v491_v33, 0.0  ;;  %v1057_v33 = vld [vmem:[%s1973_s12 + $0x38] sm:$0xff] }
 0x502   :  { %v1523_v34 = vpack.c.bf16 %v1057_v33, %v1056_v32 }
 0x503   :  { %1348 = vmatmul.mubr.msk.f32.vlgmr.msra.gmra.mrb[6].mxu1 %vm507_vm9, %v494_v35  ;;  %v1058_v35 = vld [vmem:[%s1973_s12 + $0x40] sm:$0xff] }
 0x504   :  { %1478 = vmatpush3.bf16.msra.mxu1 %v1475_v30  ;;  %1354 = vmatprep.mubr.msk.f32.mxu1 %vm200_vm2, %v595_v36  ;;  %v1055_v30 = vld [vmem:[%s1973_s12 + $0x28] sm:$0xff] }
 0x505   :  { %1480 = vmatprep.subr.bf16.mxu1 %v1479_v40 }
 0x507   :  { %1355 = vmatmul.mubr.msk.f32.vlgmr.msra.gmra.mrb[8].mxu1 %vm200_vm2, %v596_v37 }
 0x508   :  { %1482 = vmatpush3.bf16.msra.mxu1 %v1479_v40  ;;  %v1531_v40 = vpack.c.bf16 %v1061_v39, %v1060_v38 }
 0x5d6   :  { %v577_v41 = vpop.f32.mrb[6].mxu1 }
 0x5d7   :  { %v1349_v42 = vpop.f32.mrb[7].mxu1  ;;  %v578_v0 = vadd.f32 %v1183_v63, %v577_v41  ;;  %v1062_v41 = vld [vmem:[%s1973_s12 + $0x60] sm:$0xff]  ;;  %v1153_v63 = vstv %s1169_s26 }
 0x5d8   :  { %v1063_v42 = vld [vmem:[%s1973_s12 + $0x68] sm:$0xff] }
 0x5d9   :  { %v581_v1 = vmax.f32 %v578_v0, 0.0 }
 0x5da   :  { %v1356_v43 = vpop.f32.mrb[8].mxu1 }
 0x5db   :  { %682 = vrot.lane.b32.xlu1 %v1356_v43, %s1571_s7  ;;  %v669_v44 = vpop.f32.mrb[9].mxu1  ;;  %v586_v5 = vmul.f32 %v1185_v4, %v581_v1  ;;  %v1535_v43 = vpack.c.bf16 %v1063_v42, %v1062_v41  ;;  %v1155_v1 = vstv %s1170_s27  ;;  %v1157_v4 = vstv %s1171_s8 }
 0x5dc   :  { %680 = vrot.lane.b32.xlu0 %v669_v44, %s1571_s7  ;;  %v1193_v44 = vld [vmem:[%s1974_s13 + $0x7] ss:$0 sm:$0xff] }
 0x5dd   :  { %v588_v6 = vsel %vm587_vm11, %v586_v5, 0.0 }
 0x64d   :  { %v683_v45 = vpop.permute.xlu1 %682 }
 0x64e   :  { %v681_v46 = vpop.permute.xlu0 %680  ;;  %v688_v11 = vsel %vm686_vm10, %v594_v29, %v683_v45  ;;  %v1054_v29 = vld [vmem:[%s1973_s12 + $0x20] sm:$0xff] }
 0x64f   :  { %v687_v7 = vsel %vm686_vm10, %v593_v2, %v681_v46  ;;  %v1515_v2 = vpack.c.bf16 %v1053_v28, %v1052_v26  ;;  %v1519_v31 = vpack.c.bf16 %v1055_v30, %v1054_v29 }
 0x650   :  { %1361 = vmatprep.mubr.msk.f32.mxu1 %vm200_vm2, %v687_v7 }
 0x651   :  { %1362 = vmatmul.mubr.msk.f32.vlgmr.msra.gmra.mrb[10].mxu1 %vm200_vm2, %v688_v11  ;;  %1516 = vmatprep.subr.bf16.mxu0 %v1515_v2 }
 0x652   :  { %1368 = vmatprep.mubr.msk.f32.mxu1 %vm200_vm2, %v595_v36  ;;  %1518 = vmatpush3.bf16.msra.mxu0 %v1515_v2  ;;  %v1059_v36 = vld [vmem:[%s1973_s12 + $0x48] sm:$0xff] }
 0x653   :  { %1520 = vmatprep.subr.bf16.mxu0 %v1519_v31 }
 0x656   :  { %1522 = vmatpush3.bf16.msra.mxu0 %v1519_v31 }
 0x657   :  { %1524 = vmatprep.subr.bf16.mxu0 %v1523_v34 }
 0x65a   :  { %1526 = vmatpush3.bf16.msra.mxu0 %v1523_v34 }
 0x724   :  { %v1363_v9 = vpop.f32.mrb[10].mxu1 }
 0x725   :  { %v773_v12 = vadd.f32 %v1363_v9, %v1188_v47  ;;  %v767_v48 = vpop.f32.mrb[11].mxu1 }
 0x726   :  { %v768_v49 = vadd.f32 %v1188_v47, %v767_v48  ;;  %v1065_v48 = vld [vmem:[%s1973_s12 + $0x78] sm:$0xff] }
 0x727   :  { %v777_v50 = vmax.f32 %v773_v12, 0.0  ;;  %v1064_v12 = vld [vmem:[%s1973_s12 + $0x70] sm:$0xff] }
 0x728   :  { %v776_v51 = vmax.f32 %v768_v49, 0.0  ;;  %v1539_v49 = vpack.c.bf16 %v1065_v48, %v1064_v12 }
 0x72a   :  { %v1483_v52 = vpack.c.bf16 %v777_v50, %v776_v51 }
 0x72c   :  { %1484 = vmatprep.subr.bf16.mxu1 %v1483_v52 }
 0x72d   :  { %1486 = vmatpush3.bf16.msra.mxu1 %v1483_v52 }
 0x72e   :  { %1488 = vmatprep.subr.bf16.mxu1 %v1487_v54 }
 0x730   :  { %1369 = vmatmul.mubr.msk.f32.vlgmr.msra.gmra.mrb[12].mxu1 %vm200_vm2, %v596_v37  ;;  %v1527_v37 = vpack.c.bf16 %v1059_v36, %v1058_v35 }
 0x731   :  { %1490 = vmatpush3.bf16.msra.mxu1 %v1487_v54 }
 0x732   :  { %1492 = vmatprep.subr.bf16.mxu1 %v1491_v56  ;;  %1528 = vmatprep.subr.bf16.mxu0 %v1527_v37 }
 0x733   :  { %1530 = vmatpush3.bf16.msra.mxu0 %v1527_v37 }
 0x734   :  { %1532 = vmatprep.subr.bf16.mxu0 %v1531_v40 }
 0x735   :  { %1494 = vmatpush3.bf16.msra.mxu1 %v1491_v56 }
 0x736   :  { %1496 = vmatprep.subr.bf16.mxu1 %v1495_v59 }
 0x737   :  { %1534 = vmatpush3.bf16.msra.mxu0 %v1531_v40 }
 0x738   :  { %1536 = vmatprep.subr.bf16.mxu0 %v1535_v43 }
 0x739   :  { %1498 = vmatpush3.bf16.msra.mxu1 %v1495_v59  ;;  %v1200_v59 = vld [vmem:[%s1974_s13 + $0xa] ss:$0 sm:$0xff] }
 0x73a   :  { %1500 = vmatprep.subr.bf16.mxu1 %v1499_v14 }
 0x73b   :  { %1538 = vmatpush3.bf16.msra.mxu0 %v1535_v43 }
 0x73c   :  { %1540 = vmatprep.subr.bf16.mxu0 %v1539_v49 }
 0x73d   :  { %1502 = vmatpush3.bf16.msra.mxu1 %v1499_v14 }
 0x73e   :  { %1504 = vmatprep.subr.bf16.mxu1 %v1503_v10 }
 0x73f   :  { %1542 = vmatpush3.bf16.msra.mxu0 %v1539_v49 }
 0x803   :  { %v1370_v18 = vpop.f32.mrb[12].mxu1 }
 0x804   :  { %857 = vrot.lane.b32.xlu1 %v1370_v18, %s1572_s28  ;;  %v844_v62 = vpop.f32.mrb[13].mxu1  ;;  %v591_v18 = vstv %s71_s25 }
 0x805   :  { %855 = vrot.lane.b32.xlu0 %v844_v62, %s1572_s28  ;;  %s1172_s28 = sld [smem:[#allocation2 + $0x4]] }
 0x824   :  { %589 = vadd.xlane.f32.xlu0 %v588_v6 }
 0x876   :  { %v858_v13 = vpop.permute.xlu1 %857 }
 0x877   :  { %v856_v15 = vpop.permute.xlu0 %855  ;;  %v863_v20 = vsel %vm861_vm12, %v777_v50, %v858_v13  ;;  %v1196_v50 = vld [vmem:[%s1974_s13 + $0x8] ss:$0 sm:$0xff] }
 0x878   :  { %v862_v17 = vsel %vm861_vm12, %v776_v51, %v856_v15 }
 0x879   :  { %1387 = vmatprep.mubr.msk.f32.mxu1 %vm507_vm9, %v862_v17 }
 0x87a   :  { %1388 = vmatmul.mubr.msk.f32.vlgmr.msra.gmra.mrb[14].mxu1 %vm507_vm9, %v863_v20 }
 0x87b   :  { %1506 = vmatpush3.bf16.msra.mxu1 %v1503_v10  ;;  %v1160_v10 = vstv %s1172_s28 }
 0x87c   :  { %1508 = vmatprep.subr.bf16.mxu1 %v1507_v23 }
 0x87f   :  { %1510 = vmatpush3.bf16.msra.mxu1 %v1507_v23 }
 0x8b1   :  { %v590_v62 = vpop.xlane.xlu0 %589 }
 0x8b2   :  { %v592_v0 = vadd.f32 %v591_v18, %v590_v62 }
 0x8b4   :  { %v1156_v3 = vmul.f32 %v1155_v1, %v592_v0 }
 0x94d   :  { %v1389_v45 = vpop.f32.mrb[14].mxu1 }
 0x94e   :  { %v954_v46 = vadd.f32 %v1389_v45, %v1193_v44  ;;  %v948_v7 = vpop.f32.mrb[15].mxu1 }
 0x94f   :  { %v949_v11 = vadd.f32 %v1193_v44, %v948_v7 }
 0x950   :  { %v958_v9 = vmax.f32 %v954_v46, 0.0 }
 0x951   :  { %v957_v47 = vmax.f32 %v949_v11, 0.0 }
 0x953   :  { %1398 = vmatprep.mubr.msk.f32.mxu1 %vm861_vm12, %v957_v47 }
 0x954   :  { %1399 = vmatmul.mubr.msk.f32.vlgmr.msra.gmra.mrb[16].mxu1 %vm861_vm12, %v958_v9 }
 0xa27   :  { %v1400_v51 = vpop.f32.mrb[16].mxu1 }
 0xa28   :  { %v1045_v52 = vadd.f32 %v1400_v51, %v1196_v50  ;;  %v1039_v16 = vpop.f32.mrb[17].mxu1 }
 0xa29   :  { %v1040_v19 = vadd.f32 %v1196_v50, %v1039_v16 }
 0xa2a   :  { %v1049_v54 = vmax.f32 %v1045_v52, 0.0 }
 0xa2b   :  { %v1048_v53 = vmax.f32 %v1040_v19, 0.0 }
 0xa2d   :  { %1433 = vmatprep.mubr.f32.mxu0 %v1048_v53 }
 0xa2e   :  { %1434 = vmatmul.mubr.f32.vlgmr.msra.gmra.mrb[2].mxu0 %v1049_v54 }
 0xb01   :  { %v1435_v56 = vpop.f32.mrb[2].mxu0 }
 0xb02   :  { %v1136_v57 = vpop.f32.mrb[3].mxu0 }
 0xb03   :  { %v1137_v58 = vadd.f32 %v1199_v55, %v1136_v57 }
 0xb05   :  { %v1144_v60 = vmax.f32 %v1137_v58, 0.0 }
 0xb07   :  { %v1149_v61 = vmul.f32 %v1200_v59, %v1144_v60 }
 0xb09   :  { %v1150_v14 = vsel %vm507_vm9, %v1149_v61, 0.0 }
 0xb0a   :  { %1151 = vadd.xlane.f32.xlu1 %v1150_v14 }
 0xb97   :  { %v1152_v5 = vpop.xlane.xlu1 %1151 }
 0xb98   :  { %v1154_v6 = vadd.f32 %v1153_v63, %v1152_v5 }
 0xb9a   :  { %v1158_v8 = vmul.f32 %v1157_v4, %v1154_v6 }
 0xb9c   :  { %v1159_v13 = vadd.f32 %v1158_v8, %v1156_v3 }
 0xb9e   :  { %v1161_v15 = vadd.f32 %v1160_v10, %v1159_v13 }
 0xba0   :  { %1163 = vst.msk [vmem:[%s1975_s14] sm:$0xf] %vm1162_vm13, %v1161_v15 }
 0xba1   :  { %1168 = vsyncpa [#allocation3], 1 }

</bundles_post_ra>
